<compile_context>
chip_gen: v7x
topology: tpu7x:2x2x1
jax: 0.10.0
libtpu: 0.0.40
codegen_flags: <defaults>
</compile_context>

<pallas_src>
import functools

import jax
import jax.numpy as jnp
from jax import lax
from jax.experimental import pallas as pl
from jax.experimental.pallas import tpu as pltpu


# ------------------------------ Pallas kernel -------------------------------

def _ce_kernel(x_ref, t_ref, o_ref, acc_ref, *, num_classes, inv_total,
               valid_rows, apply_mask):
    """One (image, spatial-tile) step of mean cross-entropy.

    x_ref : (1, C, ts128, 128)  logits, native dtype (rows of 128 pixels)
    t_ref : (1, ts128, 128)     int32 class indices
    o_ref : (1, 8, 128)  f32    per-image partial-sum block (resident over j)
    acc_ref: (8, 128)    f32    VMEM scratch accumulator
    """
    j = pl.program_id(1)

    @pl.when(j == 0)
    def _init():
        acc_ref[...] = jnp.zeros_like(acc_ref)

    t = t_ref[0]                                    # (ts128, 128) int32
    ts128 = t.shape[0]

    # Numerically-stable log-softmax over the (short, leading) class axis:
    # unrolled dense VPU max / EUP exp / VPU add on (ts128, 128) tiles.
    m = x_ref[0, 0].astype(jnp.float32)
    for ci in range(1, num_classes):
        m = jnp.maximum(m, x_ref[0, ci].astype(jnp.float32))

    sum_exp = jnp.zeros_like(m)
    tgt_shift = jnp.zeros_like(m)                   # x[target] - m
    for ci in range(num_classes):
        xm = x_ref[0, ci].astype(jnp.float32) - m
        sum_exp = sum_exp + jnp.exp(xm)
        tgt_shift = tgt_shift + jnp.where(t == ci, xm, 0.0)

    # NLL per pixel = logsumexp(x) - x[target] = log(sum_exp) - (x[target] - m)
    per_pixel = jnp.log(sum_exp) - tgt_shift

    if apply_mask:
        # Mask rows beyond the valid spatial extent (partial last tile) and any
        # wrapper-padded pixels (their target was padded with -1).
        row = j * ts128 + lax.broadcasted_iota(jnp.int32, (ts128, 128), 0)
        valid = (row < valid_rows) & (t >= 0)
        per_pixel = jnp.where(valid, per_pixel, 0.0)

    # Accumulate into the vreg-shaped scratch with pure VPU adds.
    if ts128 % 8 == 0:
        partial = acc_ref[...]
        for r in range(0, ts128, 8):
            partial = partial + per_pixel[r:r + 8, :]
        acc_ref[...] = partial
    else:
        # Tiny / odd tile: one sublane reduce, deposited into sublane 0.
        row_sum = jnp.sum(per_pixel, axis=0, keepdims=True)          # (1, 128)
        sub0 = lax.broadcasted_iota(jnp.int32, (8, 128), 0) == 0
        acc_ref[...] += jnp.where(sub0, row_sum, 0.0)

    @pl.when(j == pl.num_programs(1) - 1)
    def _finalize():
        o_ref[0] = acc_ref[...] * inv_total


# ------------------------------ host wrapper --------------------------------

def _pick_spatial_rows(s128, c, itemsize, max_block_bytes=2 << 20):
    """Rows-of-128 pixels per tile.

    Uses the whole (padded) extent if it fits the per-block VMEM budget,
    otherwise the largest multiple of 8 that does; the remainder tile is
    masked inside the kernel.  Budget counts logits AND int32 targets.
    """
    bytes_per_row = 128 * (c * itemsize + 4)
    if s128 * bytes_per_row <= max_block_bytes:
        return int(s128)                  # full extent: always a legal block dim
    ts = (max_block_bytes // bytes_per_row) // 8 * 8
    return int(max(8, ts))


def cross_entropy_loss_2d(logits_nchw, targets_nhw):
    """Equivalent of CrossEntropyLoss2d(weight=None)(inputs, targets)."""
    n, c, h, w = logits_nchw.shape
    s = h * w

    x = logits_nchw.reshape(n, c, s)                  # free contiguous reshape
    t = targets_nhw.reshape(n, s).astype(jnp.int32)   # free contiguous reshape

    # Lane alignment: pad flattened spatial dim to a multiple of 128 if needed.
    s_pad = -(-s // 128) * 128
    if s_pad != s:
        # TODO(synk): this pad is one extra HBM pass; padded pixels get target
        # -1 and are masked out inside the kernel.
        x = jnp.pad(x, ((0, 0), (0, 0), (0, s_pad - s)))
        t = jnp.pad(t, ((0, 0), (0, s_pad - s)), constant_values=-1)
    s128 = s_pad // 128

    # Sublane-dense 4D views; native dtype streamed (no up-cast in HBM).
    x = x.reshape(n, c, s128, 128)
    t = t.reshape(n, s128, 128)

    itemsize = jnp.dtype(x.dtype).itemsize
    ts128 = _pick_spatial_rows(s128, c, itemsize)
    grid = (n, pl.cdiv(s128, ts128))
    apply_mask = (s_pad != s) or (s128 % ts128 != 0)
    inv_total = 1.0 / float(n * s)

    # Explicit VMEM budget: double-buffered logits+targets tiles + headroom.
    block_bytes = ts128 * 128 * (c * itemsize + 4)
    vmem_limit = int(max(2 * block_bytes + (4 << 20), 16 << 20))

    kernel = functools.partial(
        _ce_kernel, num_classes=c, inv_total=inv_total,
        valid_rows=s128, apply_mask=apply_mask)

    partials = pl.pallas_call(
        kernel,
        out_shape=jax.ShapeDtypeStruct((n, 8, 128), jnp.float32),
        grid=grid,
        in_specs=[
            pl.BlockSpec((1, c, ts128, 128), lambda i, j: (i, 0, j, 0)),  # logits
            pl.BlockSpec((1, ts128, 128), lambda i, j: (i, j, 0)),        # targets
        ],
        # Per-image partial sums: lane-dense (8,128) block, resident across the
        # spatial (reduction) axis; batch axis can shard across TCs on v7x.
        out_specs=pl.BlockSpec((1, 8, 128), lambda i, j: (i, 0, 0)),
        scratch_shapes=[pltpu.VMEM((8, 128), jnp.float32)],
        compiler_params=pltpu.CompilerParams(
            dimension_semantics=("parallel", "arbitrary"),
            vmem_limit_bytes=vmem_limit),
    )(x, t)
    return jnp.sum(partials)


# ---------------------------------- main -------------------------------------

if __name__ == "__main__":
    key = jax.random.PRNGKey(0)
    k1, k2, k3, k4 = jax.random.split(key, 4)

    # Case 1: f32 logits, spatial size a clean multiple of 128.
    N, C, H, W = 2, 5, 16, 16
    logits = jax.random.normal(k1, (N, C, H, W), jnp.float32)
    targets = jax.random.randint(k2, (N, H, W), 0, C, dtype=jnp.int32)

    loss = jax.jit(cross_entropy_loss_2d)(logits, targets)
    loss = jax.block_until_ready(loss)

    logp = jax.nn.log_softmax(logits, axis=1)
    ref = -jnp.mean(jnp.take_along_axis(logp, targets[:, None, :, :], axis=1))
    assert loss.shape == (), loss.shape
    assert bool(jnp.isfinite(loss))
    assert jnp.allclose(loss, ref, rtol=1e-5, atol=1e-5), (float(loss), float(ref))

    # Case 2: bf16 logits, awkward spatial size (exercises pad + mask path).
    N2, C2, H2, W2 = 2, 3, 7, 9
    logits2 = jax.random.normal(k3, (N2, C2, H2, W2), jnp.bfloat16)
    targets2 = jax.random.randint(k4, (N2, H2, W2), 0, C2, dtype=jnp.int32)

    loss2 = jax.jit(cross_entropy_loss_2d)(logits2, targets2)
    loss2 = jax.block_until_ready(loss2)

    logp2 = jax.nn.log_softmax(logits2.astype(jnp.float32), axis=1)
    ref2 = -jnp.mean(jnp.take_along_axis(logp2, targets2[:, None, :, :], axis=1))
    assert bool(jnp.isfinite(loss2))
    assert jnp.allclose(loss2, ref2, rtol=1e-5, atol=1e-5), (float(loss2), float(ref2))

    print("KERNEL_OK")
</pallas_src>

<mosaic_0001>
module attributes {stable_mosaic.version = 11 : i64} {
  func.func @_ce_kernel(%arg0: i32, %arg1: i32, %arg2: memref<1x5x2x128xf32, #tpu.memory_space<vmem>>, %arg3: memref<1x2x128xi32, #tpu.memory_space<vmem>>, %arg4: memref<1x8x128xf32, #tpu.memory_space<vmem>>, %arg5: memref<8x128xf32, #tpu.memory_space<vmem>>) attributes {dimension_semantics = [#tpu.dimension_semantics<parallel>, #tpu.dimension_semantics<arbitrary>], iteration_bounds = array<i64: 2, 1>, scalar_prefetch = 0 : i64, scratch_operands = 1 : i64, tpu.core_type = #tpu.core_type<tc>, window_params = [{transform_indices = @transform_0, window_bounds = array<i64: 1, 5, 2, 128>}, {transform_indices = @transform_1, window_bounds = array<i64: 1, 2, 128>}, {transform_indices = @transform_2, window_bounds = array<i64: 1, 8, 128>}]} {
    %c0_i32 = arith.constant 0 : i32
    %0 = arith.cmpi eq, %arg1, %c0_i32 : i32
    %1 = arith.extui %0 : i1 to i32
    %c0_i32_0 = arith.constant 0 : i32
    %2 = arith.cmpi ne, %1, %c0_i32_0 : i32
    scf.if %2 {
      %cst_55 = arith.constant 0.000000e+00 : f32
      %88 = vector.broadcast %cst_55 : f32 to vector<8x128xf32>
      %c0_56 = arith.constant 0 : index
      %c0_57 = arith.constant 0 : index
      %89 = vector.load %arg5[%c0_56, %c0_57] : memref<8x128xf32, #tpu.memory_space<vmem>>, vector<8x128xf32>
      tpu.vector_store %arg5[%c0_56, %c0_57], %88 {strides = array<i32>} : memref<8x128xf32, #tpu.memory_space<vmem>>, vector<8x128xf32>,
    } else {
    }
    %c0 = arith.constant 0 : index
    %c0_1 = arith.constant 0 : index
    %c0_2 = arith.constant 0 : index
    %3 = vector.load %arg3[%c0, %c0_1, %c0_2] : memref<1x2x128xi32, #tpu.memory_space<vmem>>, vector<1x2x128xi32>
    %4 = vector.shape_cast %3 : vector<1x2x128xi32> to vector<2x128xi32>
    %c0_3 = arith.constant 0 : index
    %c0_4 = arith.constant 0 : index
    %c0_5 = arith.constant 0 : index
    %c0_6 = arith.constant 0 : index
    %5 = vector.load %arg2[%c0_3, %c0_4, %c0_5, %c0_6] : memref<1x5x2x128xf32, #tpu.memory_space<vmem>>, vector<1x1x2x128xf32>
    %6 = vector.shape_cast %5 : vector<1x1x2x128xf32> to vector<2x128xf32>
    %c0_7 = arith.constant 0 : index
    %c1 = arith.constant 1 : index
    %c0_8 = arith.constant 0 : index
    %c0_9 = arith.constant 0 : index
    %7 = vector.load %arg2[%c0_7, %c1, %c0_8, %c0_9] : memref<1x5x2x128xf32, #tpu.memory_space<vmem>>, vector<1x1x2x128xf32>
    %8 = vector.shape_cast %7 : vector<1x1x2x128xf32> to vector<2x128xf32>
    %9 = arith.maximumf %6, %8 : vector<2x128xf32>
    %c0_10 = arith.constant 0 : index
    %c2 = arith.constant 2 : index
    %c0_11 = arith.constant 0 : index
    %c0_12 = arith.constant 0 : index
    %10 = vector.load %arg2[%c0_10, %c2, %c0_11, %c0_12] : memref<1x5x2x128xf32, #tpu.memory_space<vmem>>, vector<1x1x2x128xf32>
    %11 = vector.shape_cast %10 : vector<1x1x2x128xf32> to vector<2x128xf32>
    %12 = arith.maximumf %9, %11 : vector<2x128xf32>
    %c0_13 = arith.constant 0 : index
    %c3 = arith.constant 3 : index
    %c0_14 = arith.constant 0 : index
    %c0_15 = arith.constant 0 : index
    %13 = vector.load %arg2[%c0_13, %c3, %c0_14, %c0_15] : memref<1x5x2x128xf32, #tpu.memory_space<vmem>>, vector<1x1x2x128xf32>
    %14 = vector.shape_cast %13 : vector<1x1x2x128xf32> to vector<2x128xf32>
    %15 = arith.maximumf %12, %14 : vector<2x128xf32>
    %c0_16 = arith.constant 0 : index
    %c4 = arith.constant 4 : index
    %c0_17 = arith.constant 0 : index
    %c0_18 = arith.constant 0 : index
    %16 = vector.load %arg2[%c0_16, %c4, %c0_17, %c0_18] : memref<1x5x2x128xf32, #tpu.memory_space<vmem>>, vector<1x1x2x128xf32>
    %17 = vector.shape_cast %16 : vector<1x1x2x128xf32> to vector<2x128xf32>
    %18 = arith.maximumf %15, %17 : vector<2x128xf32>
    %cst = arith.constant 0.000000e+00 : f32
    %19 = vector.broadcast %cst : f32 to vector<2x128xf32>
    %cst_19 = arith.constant 0.000000e+00 : f32
    %20 = vector.broadcast %cst_19 : f32 to vector<2x128xf32>
    %c0_20 = arith.constant 0 : index
    %c0_21 = arith.constant 0 : index
    %c0_22 = arith.constant 0 : index
    %c0_23 = arith.constant 0 : index
    %21 = vector.load %arg2[%c0_20, %c0_21, %c0_22, %c0_23] : memref<1x5x2x128xf32, #tpu.memory_space<vmem>>, vector<1x1x2x128xf32>
    %22 = vector.shape_cast %21 : vector<1x1x2x128xf32> to vector<2x128xf32>
    %23 = arith.subf %22, %18 : vector<2x128xf32>
    %24 = math.exp %23 : vector<2x128xf32>
    %25 = arith.addf %19, %24 : vector<2x128xf32>
    %c0_i32_24 = arith.constant 0 : i32
    %26 = vector.broadcast %c0_i32_24 : i32 to vector<2x128xi32>
    %27 = arith.cmpi eq, %4, %26 : vector<2x128xi32>
    %cst_25 = arith.constant 0.000000e+00 : f32
    %28 = vector.broadcast %cst_25 : f32 to vector<2x128xf32>
    %29 = arith.select %27, %23, %28 : vector<2x128xi1>, vector<2x128xf32>
    %30 = arith.addf %20, %29 : vector<2x128xf32>
    %c0_26 = arith.constant 0 : index
    %c1_27 = arith.constant 1 : index
    %c0_28 = arith.constant 0 : index
    %c0_29 = arith.constant 0 : index
    %31 = vector.load %arg2[%c0_26, %c1_27, %c0_28, %c0_29] : memref<1x5x2x128xf32, #tpu.memory_space<vmem>>, vector<1x1x2x128xf32>
    %32 = vector.shape_cast %31 : vector<1x1x2x128xf32> to vector<2x128xf32>
    %33 = arith.subf %32, %18 : vector<2x128xf32>
    %34 = math.exp %33 : vector<2x128xf32>
    %35 = arith.addf %25, %34 : vector<2x128xf32>
    %c1_i32 = arith.constant 1 : i32
    %36 = vector.broadcast %c1_i32 : i32 to vector<2x128xi32>
    %37 = arith.cmpi eq, %4, %36 : vector<2x128xi32>
    %cst_30 = arith.constant 0.000000e+00 : f32
    %38 = vector.broadcast %cst_30 : f32 to vector<2x128xf32>
    %39 = arith.select %37, %33, %38 : vector<2x128xi1>, vector<2x128xf32>
    %40 = arith.addf %30, %39 : vector<2x128xf32>
    %c0_31 = arith.constant 0 : index
    %c2_32 = arith.constant 2 : index
    %c0_33 = arith.constant 0 : index
    %c0_34 = arith.constant 0 : index
    %41 = vector.load %arg2[%c0_31, %c2_32, %c0_33, %c0_34] : memref<1x5x2x128xf32, #tpu.memory_space<vmem>>, vector<1x1x2x128xf32>
    %42 = vector.shape_cast %41 : vector<1x1x2x128xf32> to vector<2x128xf32>
    %43 = arith.subf %42, %18 : vector<2x128xf32>
    %44 = math.exp %43 : vector<2x128xf32>
    %45 = arith.addf %35, %44 : vector<2x128xf32>
    %c2_i32 = arith.constant 2 : i32
    %46 = vector.broadcast %c2_i32 : i32 to vector<2x128xi32>
    %47 = arith.cmpi eq, %4, %46 : vector<2x128xi32>
    %cst_35 = arith.constant 0.000000e+00 : f32
    %48 = vector.broadcast %cst_35 : f32 to vector<2x128xf32>
    %49 = arith.select %47, %43, %48 : vector<2x128xi1>, vector<2x128xf32>
    %50 = arith.addf %40, %49 : vector<2x128xf32>
    %c0_36 = arith.constant 0 : index
    %c3_37 = arith.constant 3 : index
    %c0_38 = arith.constant 0 : index
    %c0_39 = arith.constant 0 : index
    %51 = vector.load %arg2[%c0_36, %c3_37, %c0_38, %c0_39] : memref<1x5x2x128xf32, #tpu.memory_space<vmem>>, vector<1x1x2x128xf32>
    %52 = vector.shape_cast %51 : vector<1x1x2x128xf32> to vector<2x128xf32>
    %53 = arith.subf %52, %18 : vector<2x128xf32>
    %54 = math.exp %53 : vector<2x128xf32>
    %55 = arith.addf %45, %54 : vector<2x128xf32>
    %c3_i32 = arith.constant 3 : i32
    %56 = vector.broadcast %c3_i32 : i32 to vector<2x128xi32>
    %57 = arith.cmpi eq, %4, %56 : vector<2x128xi32>
    %cst_40 = arith.constant 0.000000e+00 : f32
    %58 = vector.broadcast %cst_40 : f32 to vector<2x128xf32>
    %59 = arith.select %57, %53, %58 : vector<2x128xi1>, vector<2x128xf32>
    %60 = arith.addf %50, %59 : vector<2x128xf32>
    %c0_41 = arith.constant 0 : index
    %c4_42 = arith.constant 4 : index
    %c0_43 = arith.constant 0 : index
    %c0_44 = arith.constant 0 : index
    %61 = vector.load %arg2[%c0_41, %c4_42, %c0_43, %c0_44] : memref<1x5x2x128xf32, #tpu.memory_space<vmem>>, vector<1x1x2x128xf32>
    %62 = vector.shape_cast %61 : vector<1x1x2x128xf32> to vector<2x128xf32>
    %63 = arith.subf %62, %18 : vector<2x128xf32>
    %64 = math.exp %63 : vector<2x128xf32>
    %65 = arith.addf %55, %64 : vector<2x128xf32>
    %c4_i32 = arith.constant 4 : i32
    %66 = vector.broadcast %c4_i32 : i32 to vector<2x128xi32>
    %67 = arith.cmpi eq, %4, %66 : vector<2x128xi32>
    %cst_45 = arith.constant 0.000000e+00 : f32
    %68 = vector.broadcast %cst_45 : f32 to vector<2x128xf32>
    %69 = arith.select %67, %63, %68 : vector<2x128xi1>, vector<2x128xf32>
    %70 = arith.addf %60, %69 : vector<2x128xf32>
    %71 = math.log %65 : vector<2x128xf32>
    %72 = arith.subf %71, %70 : vector<2x128xf32>
    %cst_46 = arith.constant dense<0.000000e+00> : vector<128xf32>
    %73 = vector.multi_reduction <add>, %72, %cst_46 [0] : vector<2x128xf32> to vector<128xf32>
    %74 = vector.shape_cast %73 : vector<128xf32> to vector<1x128xf32>
    %75 = tpu.iota {dimensions = array<i32: 0>} : vector<8x128xi32>
    %c0_i32_47 = arith.constant 0 : i32
    %76 = vector.broadcast %c0_i32_47 : i32 to vector<8x128xi32>
    %77 = arith.cmpi eq, %75, %76 : vector<8x128xi32>
    %c0_48 = arith.constant 0 : index
    %c0_49 = arith.constant 0 : index
    %78 = vector.load %arg5[%c0_48, %c0_49] : memref<8x128xf32, #tpu.memory_space<vmem>>, vector<8x128xf32>
    %cst_50 = arith.constant 0.000000e+00 : f32
    %79 = vector.shape_cast %74 : vector<1x128xf32> to vector<1x128xf32>
    %80 = vector.broadcast %79 : vector<1x128xf32> to vector<8x128xf32>
    %81 = vector.broadcast %cst_50 : f32 to vector<8x128xf32>
    %82 = arith.select %77, %80, %81 : vector<8x128xi1>, vector<8x128xf32>
    %83 = arith.addf %78, %82 : vector<8x128xf32>
    %c0_51 = arith.constant 0 : index
    %c0_52 = arith.constant 0 : index
    %84 = vector.load %arg5[%c0_51, %c0_52] : memref<8x128xf32, #tpu.memory_space<vmem>>, vector<8x128xf32>
    tpu.vector_store %arg5[%c0_51, %c0_52], %83 {strides = array<i32>} : memref<8x128xf32, #tpu.memory_space<vmem>>, vector<8x128xf32>,
    %c0_i32_53 = arith.constant 0 : i32
    %85 = arith.cmpi eq, %arg1, %c0_i32_53 : i32
    %86 = arith.extui %85 : i1 to i32
    %c0_i32_54 = arith.constant 0 : i32
    %87 = arith.cmpi ne, %86, %c0_i32_54 : i32
    scf.if %87 {
      %c0_55 = arith.constant 0 : index
      %c0_56 = arith.constant 0 : index
      %88 = vector.load %arg5[%c0_55, %c0_56] : memref<8x128xf32, #tpu.memory_space<vmem>>, vector<8x128xf32>
      %cst_57 = arith.constant 0.001953125 : f32
      %89 = vector.broadcast %cst_57 : f32 to vector<8x128xf32>
      %90 = arith.mulf %88, %89 : vector<8x128xf32>
      %c0_58 = arith.constant 0 : index
      %c0_59 = arith.constant 0 : index
      %c0_60 = arith.constant 0 : index
      %91 = vector.load %arg4[%c0_58, %c0_59, %c0_60] : memref<1x8x128xf32, #tpu.memory_space<vmem>>, vector<1x8x128xf32>
      %92 = vector.shape_cast %91 : vector<1x8x128xf32> to vector<8x128xf32>
      %93 = vector.shape_cast %90 : vector<8x128xf32> to vector<1x8x128xf32>
      tpu.vector_store %arg4[%c0_58, %c0_59, %c0_60], %93 {strides = array<i32>} : memref<1x8x128xf32, #tpu.memory_space<vmem>>, vector<1x8x128xf32>,
    } else {
    }
    return
  }
  func.func @transform_0(%arg0: i32, %arg1: i32) -> (i32, i32, i32, i32) {
    %c0_i32 = arith.constant 0 : i32
    %c0_i32_0 = arith.constant 0 : i32
    %c0_i32_1 = arith.constant 0 : i32
    return %arg0, %c0_i32, %arg1, %c0_i32_0 : i32, i32, i32, i32
  }
  func.func @transform_1(%arg0: i32, %arg1: i32) -> (i32, i32, i32) {
    %c0_i32 = arith.constant 0 : i32
    %c0_i32_0 = arith.constant 0 : i32
    return %arg0, %arg1, %c0_i32 : i32, i32, i32
  }
  func.func @transform_2(%arg0: i32, %arg1: i32) -> (i32, i32, i32) {
    %c0_i32 = arith.constant 0 : i32
    %c0_i32_0 = arith.constant 0 : i32
    %c0_i32_1 = arith.constant 0 : i32
    return %arg0, %c0_i32, %c0_i32_0 : i32, i32, i32
  }
}

</mosaic_0001>

<bundles_post_ra>
// kernel: cross_entropy_loss_2d.1
= control target key start
LH: loop header
LB: loop body
LE: loop exit
PB: predicated region body
PF: predicated region fallthrough
CT: control target
= control target key end

     0   :  { %s443_s9 = smov 0   ;;  %s445_s10 = smov 0   ;;  %s484_s0 = inlined_call_operand.vmem [shape: f32[2,5,2,128], index: 0, kind: input, shape index: {}]   ;;  %s485_s1 = inlined_call_operand.vmem [shape: s32[2,2,128], index: 1, kind: input, shape index: {}]   ;;  %s486_s2 = inlined_call_operand.vmem [shape: f32[2,8,128], index: 2, kind: output, shape index: {}]  }
   0x1   :  { %s447_s11 = smov 0  }
   0x2 LB: > { %s24_s12 = sadd.s32 1, %s422_s10  ;;  %p357_p0 = scmp.ge.s32.totalorder %s426_s11, 1  ;;  %s426_s11 = sphi %s447_s11, %s12_s11   ;;  %s422_s10 = sphi %s445_s10, %s488_s10   ;;  %s418_s9 = sphi %s443_s9, %s487_s9  }
   0x3   : > { %p26_p1 = scmp.ge.s32.totalorder %s24_s12, 2  ;;  %p143_p2 = scmp.lt.s32.totalorder %s426_s11, 3 }
   0x5   : > { %s490_s12 = smov (%p26_p1, %s24_s12), 0  ;;  %p144_p3 = pnand %p357_p0, %p143_p2 }
   0x6   : > { %p174_p4 = scmp.lt.s32.totalorder (!%p144_p3), %s418_s9, 1  ;;  %vm250_vm5 = vcmask (!%p144_p3), 1041408   ;;  %v258_v43 = vlaneseq (!%p144_p3) }
   0x7   : > { %147 = sbr.rel (%p144_p3) target bundleno = 83 (0x53), region = 28 }
   0x8   : > { %v259_v46 = vshrl.u32 (!%p144_p3), %v258_v43, 7 }
   0xa   : > { %vm260_vm6 = vcmp.eq.s32.totalorder (!%p144_p3), %v259_v46, 0 }
   0xe   : > { %s492_s9 = smov (!%p174_p4, %s418_s9), 1 }
   0xf   : > { %s367_s13 = smul.u32 10, %s492_s9  ;;  %s359_s17 = sshll.u32 %s492_s9, 1 }
  0x10   : > { %s188_s20 = scalar_lea.vmem %s485_s1, %s359_s17  ;;  %s360_s21 = sshll.u32 %s492_s9, 3 }
  0x11   : > { %s181_s16 = scalar_lea.vmem %s484_s0, %s367_s13  ;;  %v198_v19 = vld [vmem:[%s188_s20] sm:$0x3]  ;;  %s192_s24 = scalar_lea.vmem %s486_s2, %s360_s21 }
  0x12   : > { %v199_v0 = vld [vmem:[%s181_s16] sm:$0x3]  ;;  %v361_v1 = vld [vmem:[%s181_s16 + $0x2] sm:$0x3]  ;;  %v362_v2 = vld [vmem:[%s181_s16 + $0x4] sm:$0x3] }
  0x13   : > { %v202_v3 = vmax.f32 %v199_v0, %v361_v1  ;;  %v363_v4 = vld [vmem:[%s181_s16 + $0x6] sm:$0x3]  ;;  %v364_v6 = vld [vmem:[%s181_s16 + $0x8] sm:$0x3]  ;;  %vm216_vm0 = vcmp.eq.s32.totalorder %v198_v19, 0  ;;  %vm223_vm1 = vcmp.eq.s32.totalorder %v198_v19, 1 }
  0x14   : > { %vm230_vm2 = vcmp.eq.s32.totalorder %v198_v19, 2  ;;  %vm237_vm3 = vcmp.eq.s32.totalorder %v198_v19, 3  ;;  %vm244_vm4 = vcmp.eq.s32.totalorder %v198_v19, 4 }
  0x15   : > { %v205_v5 = vmax.f32 %v202_v3, %v362_v2 }
  0x17   : > { %v208_v7 = vmax.f32 %v205_v5, %v363_v4 }
  0x19   : > { %v211_v8 = vmax.f32 %v208_v7, %v364_v6 }
  0x1b   : > { %v212_v9 = vsub.f32 %v199_v0, %v211_v8  ;;  %v219_v10 = vsub.f32 %v361_v1, %v211_v8  ;;  %v226_v11 = vsub.f32 %v362_v2, %v211_v8  ;;  %v233_v12 = vsub.f32 %v363_v4, %v211_v8 }
  0x1c   : > { %v240_v13 = vsub.f32 %v364_v6, %v211_v8 }
  0x1d   : > { %v213_v14 = vmul.f32 1.442695, %v212_v9  ;;  %v220_v15 = vmul.f32 1.442695, %v219_v10  ;;  %v227_v16 = vmul.f32 1.442695, %v226_v11 }
  0x1e   : > { %v234_v17 = vmul.f32 1.442695, %v233_v12  ;;  %v241_v18 = vmul.f32 1.442695, %v240_v13  ;;  %v217_v25 = vsel %vm216_vm0, %v212_v9, 0.0  ;;  %v224_v26 = vsel %vm223_vm1, %v219_v10, 0.0 }
  0x1f   : > { %392 = vpow2.f32 %v213_v14  ;;  %v225_v30 = vadd.f32 %v224_v26, %v217_v25  ;;  %v231_v31 = vsel %vm230_vm2, %v226_v11, 0.0  ;;  %v238_v34 = vsel %vm237_vm3, %v233_v12, 0.0 }
  0x20   : > { %394 = vpow2.f32 %v220_v15  ;;  %v245_v36 = vsel %vm244_vm4, %v240_v13, 0.0 }
  0x21   : > { %396 = vpow2.f32 %v227_v16  ;;  %v232_v33 = vadd.f32 %v231_v31, %v225_v30 }
  0x22   : > { %398 = vpow2.f32 %v234_v17 }
  0x23   : > { %400 = vpow2.f32 %v241_v18  ;;  %v239_v35 = vadd.f32 %v238_v34, %v232_v33 }
  0x25   : > { %v246_v37 = vadd.f32 %v245_v36, %v239_v35 }
  0x29   : > { %v393_v20 = vpop.eup %392 }
  0x2a   : > { %v395_v21 = vpop.eup %394 }
  0x2b   : > { %v397_v22 = vpop.eup %396  ;;  %v222_v23 = vadd.f32 %v395_v21, %v393_v20 }
  0x2c   : > { %v399_v24 = vpop.eup %398 }
  0x2d   : > { %v229_v27 = vadd.f32 %v397_v22, %v222_v23  ;;  %v401_v28 = vpop.eup %400 }
  0x2f   : > { %v236_v29 = vadd.f32 %v399_v24, %v229_v27 }
  0x31   : > { %v243_v32 = vadd.f32 %v401_v28, %v236_v29 }
  0x33   : > { %402 = vlog2.f32 %v243_v32 }
  0x3d   : > { %v403_v38 = vpop.eup %402 }
  0x3e   : > { %v248_v39 = vmul.f32 0.6931472, %v403_v38 }
  0x40   : > { %v249_v40 = vsub.f32 %v248_v39, %v246_v37 }
  0x42   : > { %v251_v41 = vsel %vm250_vm5, %v249_v40, 0.0 }
  0x43   : > { %v252_v42 = vrot.slane %v251_v41, 4 }
  0x45   : > { %v253_v44 = vadd.f32 %v252_v42, %v251_v41 }
  0x47   : > { %v254_v45 = vrot.slane %v253_v44, 2 }
  0x49   : > { %v255_v47 = vadd.f32 %v254_v45, %v253_v44 }
  0x4b   : > { %v256_v48 = vrot.slane %v255_v47, 1 }
  0x4d   : > { %v257_v49 = vadd.f32 %v256_v48, %v255_v47 }
  0x4f   : > { %v262_v50 = vsel %vm260_vm6, %v257_v49, 0.0 }
  0x50   : > { %v269_v51 = vmul.f32 0.001953125, %v262_v50 }
  0x52   : > { %270 = vst [vmem:[%s192_s24] sm:$0xff] %v269_v51 }
  0x53 PF: > { %s12_s11 = sadd.s32 1, %s426_s11   ;;  %s487_s9 = smov %s422_s10 }
  0x54   : > { %p9_p5 = scmp.ge.s32.totalorder %s12_s11, 4   ;;  %s488_s10 = smov %s490_s12 }
  0x56   :  { %11 = sbr.rel (!%p9_p5) target bundleno = 2 (0x2), region = 73 }

</bundles_post_ra>
